<compile_context>
chip_gen: v7x
topology: tpu7x:2x2x1
jax: 0.10.0
libtpu: 0.0.40
codegen_flags: <defaults>
</compile_context>

<pallas_src>
import math

import jax
import jax.numpy as jnp
from jax.experimental import pallas as pl
from jax.experimental.pallas import tpu as pltpu

_LN_EPS = 1e-5


def _layernorm(v, gamma, beta):
    mu = jnp.mean(v, axis=-1, keepdims=True)
    var = jnp.mean((v - mu) ** 2, axis=-1, keepdims=True)
    return (v - mu) * jax.lax.rsqrt(var + _LN_EPS) * gamma + beta


def _encoder_kernel(
    x_ref,              # (1, L, D)   f32   full sequence for this batch element
    wq_ref, bq_ref,     # (1, D, dk) bf16 / (1, 1, dk) f32   (1/sqrt(dk) folded in)
    wk_ref, bk_ref,     # (1, D, dk) bf16 / (1, 1, dk) f32
    wv_ref, bv_ref,     # (1, D, dk) bf16 / (1, 1, dk) f32
    wp_ref,             # (1, dk, D) bf16   per-head slice of output projection
    bp_ref,             # (1, D) f32
    g1_ref, be1_ref,    # (1, D) f32
    g2_ref, be2_ref,    # (1, D) f32
    w1_ref, b1_ref,     # (D, F) bf16 / (1, F) f32
    w2_ref, b2_ref,     # (F, D) bf16 / (1, D) f32
    o_ref,              # (1, tq, D) f32
    yf_scr,             # VMEM (L, D) bf16  : LayerNorm1(x), cached across heads
    acc_scr,            # VMEM (tq, D) f32  : attention output accumulator over heads
):
    qi = pl.program_id(1)
    h = pl.program_id(2)
    num_heads = pl.num_programs(2)

    tq = o_ref.shape[1]
    qs = pl.multiple_of(qi * tq, tq)

    # ---- once per (batch, query-tile): LayerNorm1 of the full sequence + init acc ----
    @pl.when(h == 0)
    def _init():
        yf_scr[...] = _layernorm(x_ref[0], g1_ref[...], be1_ref[...]).astype(jnp.bfloat16)
        acc_scr[...] = jnp.zeros_like(acc_scr)

    yf = yf_scr[...]                      # (L, D)  bf16
    yq = yf_scr[pl.ds(qs, tq), :]         # (tq, D) bf16

    # ---- per-head projections (head slicing done by BlockSpec, not by lane slices) ----
    q = jnp.dot(yq, wq_ref[0], preferred_element_type=jnp.float32) + bq_ref[0]  # (tq, dk)
    k = jnp.dot(yf, wk_ref[0], preferred_element_type=jnp.float32) + bk_ref[0]  # (L,  dk)
    v = jnp.dot(yf, wv_ref[0], preferred_element_type=jnp.float32) + bv_ref[0]  # (L,  dk)

    # ---- scaled dot-product attention for this head (scale already in Wq/bq) ----
    s = jax.lax.dot_general(
        q.astype(jnp.bfloat16), k.astype(jnp.bfloat16),
        dimension_numbers=(((1,), (1,)), ((), ())),      # q @ k.T, no transpose op
        preferred_element_type=jnp.float32)              # (tq, L) f32
    s = s - jnp.max(s, axis=-1, keepdims=True)
    e = jnp.exp(s)
    p = e * pl.reciprocal(jnp.sum(e, axis=-1, keepdims=True), approx=True)

    z = jnp.dot(p.astype(jnp.bfloat16), v.astype(jnp.bfloat16),
                preferred_element_type=jnp.float32)      # (tq, dk)

    # accumulate this head's contribution to the output projection
    acc_scr[...] += jnp.dot(z.astype(jnp.bfloat16), wp_ref[0],
                            preferred_element_type=jnp.float32)

    # ---- after the last head: residual 1, LayerNorm2, MLP, residual 2 ----
    @pl.when(h == num_heads - 1)
    def _finalize():
        x_q = x_ref[0, pl.ds(qs, tq), :]                 # (tq, D) f32
        x1 = x_q + acc_scr[...] + bp_ref[...]
        y2 = _layernorm(x1, g2_ref[...], be2_ref[...])
        h1 = jnp.dot(y2.astype(jnp.bfloat16), w1_ref[...],
                     preferred_element_type=jnp.float32) + b1_ref[...]
        # exact (erf-based) GELU, matching torch.nn.GELU() default
        h1 = 0.5 * h1 * (1.0 + jax.lax.erf(h1 * (1.0 / math.sqrt(2.0))))
        h2 = jnp.dot(h1.astype(jnp.bfloat16), w2_ref[...],
                     preferred_element_type=jnp.float32) + b2_ref[...]
        o_ref[0] = (x1 + h2).astype(o_ref.dtype)


def transformer_encoder_layer(x, params, *, num_heads, q_tile=256):
    """params are stored in PyTorch layout:
       win_w (3D, D), win_b (3D,), proj_w (D, D), proj_b (D,),
       ln{1,2}_{g,b} (D,), mlp1_w (F, D), mlp1_b (F,), mlp2_w (D, F), mlp2_b (D,)."""
    B, L, D = x.shape
    assert D % num_heads == 0
    d_k = D // num_heads
    scale = 1.0 / math.sqrt(d_k)
    F_dim = params["mlp1_w"].shape[0]

    # --- wrapper-side weight prep: pre-transpose, split per head, cast to bf16 ---
    def heads_in_out(w_torch_out_in):     # (D_out, D_in) -> (H, D_in, d_k)
        return jnp.transpose(w_torch_out_in, (1, 0)).reshape(D, num_heads, d_k).transpose(1, 0, 2)

    win_w, win_b = params["win_w"], params["win_b"]
    wq_h = (heads_in_out(win_w[0:D]) * scale).astype(jnp.bfloat16)      # scale folded
    wk_h = heads_in_out(win_w[D:2 * D]).astype(jnp.bfloat16)
    wv_h = heads_in_out(win_w[2 * D:3 * D]).astype(jnp.bfloat16)
    bq_h = (win_b[0:D] * scale).reshape(num_heads, 1, d_k).astype(jnp.float32)
    bk_h = win_b[D:2 * D].reshape(num_heads, 1, d_k).astype(jnp.float32)
    bv_h = win_b[2 * D:3 * D].reshape(num_heads, 1, d_k).astype(jnp.float32)

    wp_h = jnp.transpose(params["proj_w"], (1, 0)).reshape(num_heads, d_k, D).astype(jnp.bfloat16)
    bp = params["proj_b"].reshape(1, D).astype(jnp.float32)

    g1 = params["ln1_g"].reshape(1, D).astype(jnp.float32)
    be1 = params["ln1_b"].reshape(1, D).astype(jnp.float32)
    g2 = params["ln2_g"].reshape(1, D).astype(jnp.float32)
    be2 = params["ln2_b"].reshape(1, D).astype(jnp.float32)

    w1 = jnp.transpose(params["mlp1_w"], (1, 0)).astype(jnp.bfloat16)   # (D, F)
    b1 = params["mlp1_b"].reshape(1, F_dim).astype(jnp.float32)
    w2 = jnp.transpose(params["mlp2_w"], (1, 0)).astype(jnp.bfloat16)   # (F, D)
    b2 = params["mlp2_b"].reshape(1, D).astype(jnp.float32)

    # --- query tiling ---
    tq = L if L <= q_tile else q_tile
    assert L % tq == 0 and (tq == L or tq % 8 == 0), "q_tile must divide L (mult of 8)"
    nq = L // tq
    grid = (B, nq, num_heads)

    def full(arr):
        return pl.BlockSpec(arr.shape, lambda b, qi, h, _nd=arr.ndim: (0,) * _nd)

    def per_head(arr):
        return pl.BlockSpec((1,) + arr.shape[1:], lambda b, qi, h: (h, 0, 0))

    in_specs = [
        pl.BlockSpec((1, L, D), lambda b, qi, h: (b, 0, 0)),   # x: full sequence per batch
        per_head(wq_h), per_head(bq_h),
        per_head(wk_h), per_head(bk_h),
        per_head(wv_h), per_head(bv_h),
        per_head(wp_h),
        full(bp),
        full(g1), full(be1), full(g2), full(be2),
        full(w1), full(b1), full(w2), full(b2),
    ]
    out_spec = pl.BlockSpec((1, tq, D), lambda b, qi, h: (b, qi, 0))

    # --- explicit scoped-VMEM budget (double-buffered blocks + scratch + slack) ---
    block_bytes = (4 * L * D + 4 * tq * D                     # x block + out block (f32)
                   + 2 * 3 * D * d_k + 2 * d_k * D            # per-head bf16 weight blocks
                   + 2 * (D * F_dim + F_dim * D)              # MLP bf16 weights
                   + 4 * (3 * d_k + 6 * D + F_dim))           # biases / LN params
    scratch_bytes = 2 * L * D + 4 * tq * D
    interm_bytes = 4 * (2 * tq * L + 2 * L * d_k + 2 * tq * F_dim + 4 * tq * D)
    vmem_limit = int(min(max(2 * block_bytes + scratch_bytes + 2 * interm_bytes,
                             32 * 1024 * 1024), 64 * 1024 * 1024))

    return pl.pallas_call(
        _encoder_kernel,
        out_shape=jax.ShapeDtypeStruct((B, L, D), x.dtype),
        grid_spec=pltpu.PrefetchScalarGridSpec(
            num_scalar_prefetch=0,
            grid=grid,
            in_specs=in_specs,
            out_specs=out_spec,
            scratch_shapes=[
                pltpu.VMEM((L, D), jnp.bfloat16),   # LayerNorm1(x) cache
                pltpu.VMEM((tq, D), jnp.float32),   # attention accumulator over heads
            ]),
        compiler_params=pltpu.CompilerParams(
            dimension_semantics=("parallel", "parallel", "arbitrary"),
            vmem_limit_bytes=vmem_limit),
    )(x, wq_h, bq_h, wk_h, bk_h, wv_h, bv_h, wp_h, bp,
      g1, be1, g2, be2, w1, b1, w2, b2)


def _reference(x, params, *, num_heads):
    """Pure-JAX f32 reference mirroring the PyTorch forward (eval mode)."""
    B, L, D = x.shape
    d_k = D // num_heads
    scale = 1.0 / math.sqrt(d_k)

    def ln(v, g, b):
        mu = jnp.mean(v, axis=-1, keepdims=True)
        var = jnp.mean((v - mu) ** 2, axis=-1, keepdims=True)
        return (v - mu) / jnp.sqrt(var + _LN_EPS) * g + b

    y = ln(x, params["ln1_g"], params["ln1_b"])
    qkv = y @ params["win_w"].T + params["win_b"]
    Q, K, V = jnp.split(qkv, 3, axis=-1)
    Q = Q.reshape(B, L, num_heads, d_k).transpose(0, 2, 1, 3)
    K = K.reshape(B, L, num_heads, d_k).transpose(0, 2, 1, 3)
    V = V.reshape(B, L, num_heads, d_k).transpose(0, 2, 1, 3)
    S = jnp.einsum("bhld,bhmd->bhlm", Q, K) * scale
    A = jax.nn.softmax(S, axis=-1)
    z = jnp.einsum("bhlm,bhmd->bhld", A, V)
    z = z.transpose(0, 2, 1, 3).reshape(B, L, D)
    attn = z @ params["proj_w"].T + params["proj_b"]
    x1 = x + attn
    y2 = ln(x1, params["ln2_g"], params["ln2_b"])
    hmid = y2 @ params["mlp1_w"].T + params["mlp1_b"]
    hmid = 0.5 * hmid * (1.0 + jax.lax.erf(hmid / math.sqrt(2.0)))
    out = hmid @ params["mlp2_w"].T + params["mlp2_b"]
    return x1 + out


if __name__ == "__main__":
    B, L = 2, 8
    d_model, num_heads, dim_MLP = 32, 4, 64

    root = jax.random.PRNGKey(0)
    kx, *ks = jax.random.split(root, 10)

    def uinit(k, shape, fan_in):
        bound = 1.0 / math.sqrt(fan_in)
        return jax.random.uniform(k, shape, jnp.float32, -bound, bound)

    params = {
        "win_w": uinit(ks[0], (3 * d_model, d_model), d_model),
        "win_b": uinit(ks[1], (3 * d_model,), d_model),
        "proj_w": uinit(ks[2], (d_model, d_model), d_model),
        "proj_b": uinit(ks[3], (d_model,), d_model),
        "ln1_g": jnp.ones((d_model,), jnp.float32),
        "ln1_b": jnp.zeros((d_model,), jnp.float32),
        "ln2_g": jnp.ones((d_model,), jnp.float32),
        "ln2_b": jnp.zeros((d_model,), jnp.float32),
        "mlp1_w": uinit(ks[4], (dim_MLP, d_model), d_model),
        "mlp1_b": uinit(ks[5], (dim_MLP,), d_model),
        "mlp2_w": uinit(ks[6], (d_model, dim_MLP), dim_MLP),
        "mlp2_b": uinit(ks[7], (d_model,), dim_MLP),
    }

    x = jax.random.normal(kx, (B, L, d_model), jnp.float32)

    out = transformer_encoder_layer(x, params, num_heads=num_heads)
    out = jax.block_until_ready(out)

    ref = _reference(x, params, num_heads=num_heads)
    assert out.shape == (B, L, d_model)
    # Kernel feeds the MXU in bf16 (f32 accumulation), so compare loosely vs f32 ref.
    assert jnp.allclose(out, ref, atol=3e-2, rtol=3e-2), "mismatch vs reference"

    print("KERNEL_OK")
</pallas_src>

<mosaic_0001>
module attributes {stable_mosaic.version = 11 : i64} {
  func.func @_encoder_kernel(%arg0: i32, %arg1: i32, %arg2: i32, %arg3: memref<1x8x32xf32, #tpu.memory_space<vmem>>, %arg4: memref<1x32x8xbf16, #tpu.memory_space<vmem>>, %arg5: memref<1x1x8xf32, #tpu.memory_space<vmem>>, %arg6: memref<1x32x8xbf16, #tpu.memory_space<vmem>>, %arg7: memref<1x1x8xf32, #tpu.memory_space<vmem>>, %arg8: memref<1x32x8xbf16, #tpu.memory_space<vmem>>, %arg9: memref<1x1x8xf32, #tpu.memory_space<vmem>>, %arg10: memref<1x8x32xbf16, #tpu.memory_space<vmem>>, %arg11: memref<1x32xf32, #tpu.memory_space<vmem>>, %arg12: memref<1x32xf32, #tpu.memory_space<vmem>>, %arg13: memref<1x32xf32, #tpu.memory_space<vmem>>, %arg14: memref<1x32xf32, #tpu.memory_space<vmem>>, %arg15: memref<1x32xf32, #tpu.memory_space<vmem>>, %arg16: memref<32x64xbf16, #tpu.memory_space<vmem>>, %arg17: memref<1x64xf32, #tpu.memory_space<vmem>>, %arg18: memref<64x32xbf16, #tpu.memory_space<vmem>>, %arg19: memref<1x32xf32, #tpu.memory_space<vmem>>, %arg20: memref<1x8x32xf32, #tpu.memory_space<vmem>>, %arg21: memref<8x32xbf16, #tpu.memory_space<vmem>>, %arg22: memref<8x32xf32, #tpu.memory_space<vmem>>) attributes {dimension_semantics = [#tpu.dimension_semantics<parallel>, #tpu.dimension_semantics<parallel>, #tpu.dimension_semantics<arbitrary>], iteration_bounds = array<i64: 2, 1, 4>, scalar_prefetch = 0 : i64, scratch_operands = 2 : i64, tpu.core_type = #tpu.core_type<tc>, window_params = [{transform_indices = @transform_0, window_bounds = array<i64: 1, 8, 32>}, {transform_indices = @transform_1, window_bounds = array<i64: 1, 32, 8>}, {transform_indices = @transform_2, window_bounds = array<i64: 1, 1, 8>}, {transform_indices = @transform_3, window_bounds = array<i64: 1, 32, 8>}, {transform_indices = @transform_4, window_bounds = array<i64: 1, 1, 8>}, {transform_indices = @transform_5, window_bounds = array<i64: 1, 32, 8>}, {transform_indices = @transform_6, window_bounds = array<i64: 1, 1, 8>}, {transform_indices = @transform_7, window_bounds = array<i64: 1, 8, 32>}, {pipeline_mode = #tpu.pipeline_mode<synchronous>, transform_indices = @transform_8, window_bounds = array<i64: 1, 32>}, {pipeline_mode = #tpu.pipeline_mode<synchronous>, transform_indices = @transform_9, window_bounds = array<i64: 1, 32>}, {pipeline_mode = #tpu.pipeline_mode<synchronous>, transform_indices = @transform_10, window_bounds = array<i64: 1, 32>}, {pipeline_mode = #tpu.pipeline_mode<synchronous>, transform_indices = @transform_11, window_bounds = array<i64: 1, 32>}, {pipeline_mode = #tpu.pipeline_mode<synchronous>, transform_indices = @transform_12, window_bounds = array<i64: 1, 32>}, {pipeline_mode = #tpu.pipeline_mode<synchronous>, transform_indices = @transform_13, window_bounds = array<i64: 32, 64>}, {pipeline_mode = #tpu.pipeline_mode<synchronous>, transform_indices = @transform_14, window_bounds = array<i64: 1, 64>}, {pipeline_mode = #tpu.pipeline_mode<synchronous>, transform_indices = @transform_15, window_bounds = array<i64: 64, 32>}, {pipeline_mode = #tpu.pipeline_mode<synchronous>, transform_indices = @transform_16, window_bounds = array<i64: 1, 32>}, {transform_indices = @transform_17, window_bounds = array<i64: 1, 8, 32>}]} {
    %c8_i32 = arith.constant 8 : i32
    %0 = arith.muli %arg1, %c8_i32 : i32
    %1 = tpu.assume_multiple %0, 8 : i32
    %c0_i32 = arith.constant 0 : i32
    %2 = arith.cmpi eq, %arg2, %c0_i32 : i32
    %3 = arith.extui %2 : i1 to i32
    %c0_i32_0 = arith.constant 0 : i32
    %4 = arith.cmpi ne, %3, %c0_i32_0 : i32
    scf.if %4 {
      %c0_36 = arith.constant 0 : index
      %c0_37 = arith.constant 0 : index
      %c0_38 = arith.constant 0 : index
      %55 = vector.load %arg3[%c0_36, %c0_37, %c0_38] : memref<1x8x32xf32, #tpu.memory_space<vmem>>, vector<1x8x32xf32>
      %56 = vector.shape_cast %55 : vector<1x8x32xf32> to vector<8x32xf32>
      %c0_39 = arith.constant 0 : index
      %c0_40 = arith.constant 0 : index
      %57 = vector.load %arg12[%c0_39, %c0_40] : memref<1x32xf32, #tpu.memory_space<vmem>>, vector<1x32xf32>
      %c0_41 = arith.constant 0 : index
      %c0_42 = arith.constant 0 : index
      %58 = vector.load %arg13[%c0_41, %c0_42] : memref<1x32xf32, #tpu.memory_space<vmem>>, vector<1x32xf32>
      %cst_43 = arith.constant dense<0.000000e+00> : vector<8xf32>
      %59 = vector.multi_reduction <add>, %56, %cst_43 [1] : vector<8x32xf32> to vector<8xf32>
      %60 = vector.shape_cast %59 : vector<8xf32> to vector<8x1xf32>
      %cst_44 = arith.constant 3.200000e+01 : f32
      %61 = vector.broadcast %cst_44 : f32 to vector<8x1xf32>
      %62 = arith.divf %60, %61 : vector<8x1xf32>
      %63 = vector.broadcast %62 : vector<8x1xf32> to vector<8x32xf32>
      %64 = arith.subf %56, %63 : vector<8x32xf32>
      %65 = arith.mulf %64, %64 : vector<8x32xf32>
      %cst_45 = arith.constant dense<0.000000e+00> : vector<8xf32>
      %66 = vector.multi_reduction <add>, %65, %cst_45 [1] : vector<8x32xf32> to vector<8xf32>
      %67 = vector.shape_cast %66 : vector<8xf32> to vector<8x1xf32>
      %cst_46 = arith.constant 3.200000e+01 : f32
      %68 = vector.broadcast %cst_46 : f32 to vector<8x1xf32>
      %69 = arith.divf %67, %68 : vector<8x1xf32>
      %70 = vector.broadcast %62 : vector<8x1xf32> to vector<8x32xf32>
      %71 = arith.subf %56, %70 : vector<8x32xf32>
      %cst_47 = arith.constant 9.99999974E-6 : f32
      %72 = vector.broadcast %cst_47 : f32 to vector<8x1xf32>
      %73 = arith.addf %69, %72 : vector<8x1xf32>
      %74 = math.rsqrt %73 : vector<8x1xf32>
      %75 = vector.broadcast %74 : vector<8x1xf32> to vector<8x32xf32>
      %76 = arith.mulf %71, %75 : vector<8x32xf32>
      %77 = vector.broadcast %57 : vector<1x32xf32> to vector<8x32xf32>
      %78 = arith.mulf %76, %77 : vector<8x32xf32>
      %79 = vector.broadcast %58 : vector<1x32xf32> to vector<8x32xf32>
      %80 = arith.addf %78, %79 : vector<8x32xf32>
      %81 = arith.truncf %80 : vector<8x32xf32> to vector<8x32xbf16>
      %c0_48 = arith.constant 0 : index
      %c0_49 = arith.constant 0 : index
      %82 = vector.load %arg21[%c0_48, %c0_49] : memref<8x32xbf16, #tpu.memory_space<vmem>>, vector<8x32xbf16>
      tpu.vector_store %arg21[%c0_48, %c0_49], %81 {strides = array<i32>} : memref<8x32xbf16, #tpu.memory_space<vmem>>, vector<8x32xbf16>,
      %cst_50 = arith.constant 0.000000e+00 : f32
      %83 = vector.broadcast %cst_50 : f32 to vector<8x32xf32>
      %c0_51 = arith.constant 0 : index
      %c0_52 = arith.constant 0 : index
      %84 = vector.load %arg22[%c0_51, %c0_52] : memref<8x32xf32, #tpu.memory_space<vmem>>, vector<8x32xf32>
      tpu.vector_store %arg22[%c0_51, %c0_52], %83 {strides = array<i32>} : memref<8x32xf32, #tpu.memory_space<vmem>>, vector<8x32xf32>,
    } else {
    }
    %c0 = arith.constant 0 : index
    %c0_1 = arith.constant 0 : index
    %5 = vector.load %arg21[%c0, %c0_1] : memref<8x32xbf16, #tpu.memory_space<vmem>>, vector<8x32xbf16>
    %6 = arith.index_cast %1 : i32 to index
    %c0_2 = arith.constant 0 : index
    %7 = vector.load %arg21[%6, %c0_2] : memref<8x32xbf16, #tpu.memory_space<vmem>>, vector<8x32xbf16>
    %c0_3 = arith.constant 0 : index
    %c0_4 = arith.constant 0 : index
    %c0_5 = arith.constant 0 : index
    %8 = vector.load %arg4[%c0_3, %c0_4, %c0_5] : memref<1x32x8xbf16, #tpu.memory_space<vmem>>, vector<1x32x8xbf16>
    %9 = vector.shape_cast %8 : vector<1x32x8xbf16> to vector<32x8xbf16>
    %cst = arith.constant dense<0.000000e+00> : vector<8x8xf32>
    %10 = tpu.matmul %7, %9, %cst {dimension_numbers = #tpu.dot_dimension_numbers<[1], [0], [0], [1], [0, 0, 1, 1], [], []>} : vector<8x32xbf16>, vector<32x8xbf16>, vector<8x8xf32> -> vector<8x8xf32>
    %c0_6 = arith.constant 0 : index
    %c0_7 = arith.constant 0 : index
    %c0_8 = arith.constant 0 : index
    %11 = vector.load %arg5[%c0_6, %c0_7, %c0_8] : memref<1x1x8xf32, #tpu.memory_space<vmem>>, vector<1x1x8xf32>
    %12 = vector.shape_cast %11 : vector<1x1x8xf32> to vector<1x8xf32>
    %13 = vector.broadcast %12 : vector<1x8xf32> to vector<8x8xf32>
    %14 = arith.addf %10, %13 : vector<8x8xf32>
    %c0_9 = arith.constant 0 : index
    %c0_10 = arith.constant 0 : index
    %c0_11 = arith.constant 0 : index
    %15 = vector.load %arg6[%c0_9, %c0_10, %c0_11] : memref<1x32x8xbf16, #tpu.memory_space<vmem>>, vector<1x32x8xbf16>
    %16 = vector.shape_cast %15 : vector<1x32x8xbf16> to vector<32x8xbf16>
    %cst_12 = arith.constant dense<0.000000e+00> : vector<8x8xf32>
    %17 = tpu.matmul %5, %16, %cst_12 {dimension_numbers = #tpu.dot_dimension_numbers<[1], [0], [0], [1], [0, 0, 1, 1], [], []>} : vector<8x32xbf16>, vector<32x8xbf16>, vector<8x8xf32> -> vector<8x8xf32>
    %c0_13 = arith.constant 0 : index
    %c0_14 = arith.constant 0 : index
    %c0_15 = arith.constant 0 : index
    %18 = vector.load %arg7[%c0_13, %c0_14, %c0_15] : memref<1x1x8xf32, #tpu.memory_space<vmem>>, vector<1x1x8xf32>
    %19 = vector.shape_cast %18 : vector<1x1x8xf32> to vector<1x8xf32>
    %20 = vector.broadcast %19 : vector<1x8xf32> to vector<8x8xf32>
    %21 = arith.addf %17, %20 : vector<8x8xf32>
    %c0_16 = arith.constant 0 : index
    %c0_17 = arith.constant 0 : index
    %c0_18 = arith.constant 0 : index
    %22 = vector.load %arg8[%c0_16, %c0_17, %c0_18] : memref<1x32x8xbf16, #tpu.memory_space<vmem>>, vector<1x32x8xbf16>
    %23 = vector.shape_cast %22 : vector<1x32x8xbf16> to vector<32x8xbf16>
    %cst_19 = arith.constant dense<0.000000e+00> : vector<8x8xf32>
    %24 = tpu.matmul %5, %23, %cst_19 {dimension_numbers = #tpu.dot_dimension_numbers<[1], [0], [0], [1], [0, 0, 1, 1], [], []>} : vector<8x32xbf16>, vector<32x8xbf16>, vector<8x8xf32> -> vector<8x8xf32>
    %c0_20 = arith.constant 0 : index
    %c0_21 = arith.constant 0 : index
    %c0_22 = arith.constant 0 : index
    %25 = vector.load %arg9[%c0_20, %c0_21, %c0_22] : memref<1x1x8xf32, #tpu.memory_space<vmem>>, vector<1x1x8xf32>
    %26 = vector.shape_cast %25 : vector<1x1x8xf32> to vector<1x8xf32>
    %27 = vector.broadcast %26 : vector<1x8xf32> to vector<8x8xf32>
    %28 = arith.addf %24, %27 : vector<8x8xf32>
    %29 = arith.truncf %14 : vector<8x8xf32> to vector<8x8xbf16>
    %30 = arith.truncf %21 : vector<8x8xf32> to vector<8x8xbf16>
    %cst_23 = arith.constant dense<0.000000e+00> : vector<8x8xf32>
    %31 = tpu.matmul %29, %30, %cst_23 {dimension_numbers = #tpu.dot_dimension_numbers<[1], [1], [0], [0], [0, 0, 1, 0], [], []>} : vector<8x8xbf16>, vector<8x8xbf16>, vector<8x8xf32> -> vector<8x8xf32>
    %cst_24 = arith.constant dense<0xFF800000> : vector<8xf32>
    %32 = vector.multi_reduction <maximumf>, %31, %cst_24 [1] : vector<8x8xf32> to vector<8xf32>
    %33 = vector.shape_cast %32 : vector<8xf32> to vector<8x1xf32>
    %34 = vector.broadcast %33 : vector<8x1xf32> to vector<8x8xf32>
    %35 = arith.subf %31, %34 : vector<8x8xf32>
    %36 = math.exp %35 : vector<8x8xf32>
    %cst_25 = arith.constant dense<0.000000e+00> : vector<8xf32>
    %37 = vector.multi_reduction <add>, %36, %cst_25 [1] : vector<8x8xf32> to vector<8xf32>
    %38 = vector.shape_cast %37 : vector<8xf32> to vector<8x1xf32>
    %39 = tpu.reciprocal %38 {approx = true} : vector<8x1xf32> -> vector<8x1xf32>
    %40 = vector.broadcast %39 : vector<8x1xf32> to vector<8x8xf32>
    %41 = arith.mulf %36, %40 : vector<8x8xf32>
    %42 = arith.truncf %41 : vector<8x8xf32> to vector<8x8xbf16>
    %43 = arith.truncf %28 : vector<8x8xf32> to vector<8x8xbf16>
    %cst_26 = arith.constant dense<0.000000e+00> : vector<8x8xf32>
    %44 = tpu.matmul %42, %43, %cst_26 {dimension_numbers = #tpu.dot_dimension_numbers<[1], [0], [0], [1], [0, 0, 1, 1], [], []>} : vector<8x8xbf16>, vector<8x8xbf16>, vector<8x8xf32> -> vector<8x8xf32>
    %c0_27 = arith.constant 0 : index
    %c0_28 = arith.constant 0 : index
    %45 = vector.load %arg22[%c0_27, %c0_28] : memref<8x32xf32, #tpu.memory_space<vmem>>, vector<8x32xf32>
    %46 = arith.truncf %44 : vector<8x8xf32> to vector<8x8xbf16>
    %c0_29 = arith.constant 0 : index
    %c0_30 = arith.constant 0 : index
    %c0_31 = arith.constant 0 : index
    %47 = vector.load %arg10[%c0_29, %c0_30, %c0_31] : memref<1x8x32xbf16, #tpu.memory_space<vmem>>, vector<1x8x32xbf16>
    %48 = vector.shape_cast %47 : vector<1x8x32xbf16> to vector<8x32xbf16>
    %cst_32 = arith.constant dense<0.000000e+00> : vector<8x32xf32>
    %49 = tpu.matmul %46, %48, %cst_32 {dimension_numbers = #tpu.dot_dimension_numbers<[1], [0], [0], [1], [0, 0, 1, 1], [], []>} : vector<8x8xbf16>, vector<8x32xbf16>, vector<8x32xf32> -> vector<8x32xf32>
    %50 = arith.addf %45, %49 : vector<8x32xf32>
    %c0_33 = arith.constant 0 : index
    %c0_34 = arith.constant 0 : index
    %51 = vector.load %arg22[%c0_33, %c0_34] : memref<8x32xf32, #tpu.memory_space<vmem>>, vector<8x32xf32>
    tpu.vector_store %arg22[%c0_33, %c0_34], %50 {strides = array<i32>} : memref<8x32xf32, #tpu.memory_space<vmem>>, vector<8x32xf32>,
    %c3_i32 = arith.constant 3 : i32
    %52 = arith.cmpi eq, %arg2, %c3_i32 : i32
    %53 = arith.extui %52 : i1 to i32
    %c0_i32_35 = arith.constant 0 : i32
    %54 = arith.cmpi ne, %53, %c0_i32_35 : i32
    scf.if %54 {
      %c0_36 = arith.constant 0 : index
      %55 = arith.index_cast %1 : i32 to index
      %c0_37 = arith.constant 0 : index
      %56 = vector.load %arg3[%c0_36, %55, %c0_37] : memref<1x8x32xf32, #tpu.memory_space<vmem>>, vector<1x8x32xf32>
      %57 = vector.shape_cast %56 : vector<1x8x32xf32> to vector<8x32xf32>
      %c0_38 = arith.constant 0 : index
      %c0_39 = arith.constant 0 : index
      %58 = vector.load %arg22[%c0_38, %c0_39] : memref<8x32xf32, #tpu.memory_space<vmem>>, vector<8x32xf32>
      %59 = arith.addf %57, %58 : vector<8x32xf32>
      %c0_40 = arith.constant 0 : index
      %c0_41 = arith.constant 0 : index
      %60 = vector.load %arg11[%c0_40, %c0_41] : memref<1x32xf32, #tpu.memory_space<vmem>>, vector<1x32xf32>
      %61 = vector.broadcast %60 : vector<1x32xf32> to vector<8x32xf32>
      %62 = arith.addf %59, %61 : vector<8x32xf32>
      %c0_42 = arith.constant 0 : index
      %c0_43 = arith.constant 0 : index
      %63 = vector.load %arg14[%c0_42, %c0_43] : memref<1x32xf32, #tpu.memory_space<vmem>>, vector<1x32xf32>
      %c0_44 = arith.constant 0 : index
      %c0_45 = arith.constant 0 : index
      %64 = vector.load %arg15[%c0_44, %c0_45] : memref<1x32xf32, #tpu.memory_space<vmem>>, vector<1x32xf32>
      %cst_46 = arith.constant dense<0.000000e+00> : vector<8xf32>
      %65 = vector.multi_reduction <add>, %62, %cst_46 [1] : vector<8x32xf32> to vector<8xf32>
      %66 = vector.shape_cast %65 : vector<8xf32> to vector<8x1xf32>
      %cst_47 = arith.constant 3.200000e+01 : f32
      %67 = vector.broadcast %cst_47 : f32 to vector<8x1xf32>
      %68 = arith.divf %66, %67 : vector<8x1xf32>
      %69 = vector.broadcast %68 : vector<8x1xf32> to vector<8x32xf32>
      %70 = arith.subf %62, %69 : vector<8x32xf32>
      %71 = arith.mulf %70, %70 : vector<8x32xf32>
      %cst_48 = arith.constant dense<0.000000e+00> : vector<8xf32>
      %72 = vector.multi_reduction <add>, %71, %cst_48 [1] : vector<8x32xf32> to vector<8xf32>
      %73 = vector.shape_cast %72 : vector<8xf32> to vector<8x1xf32>
      %cst_49 = arith.constant 3.200000e+01 : f32
      %74 = vector.broadcast %cst_49 : f32 to vector<8x1xf32>
      %75 = arith.divf %73, %74 : vector<8x1xf32>
      %76 = vector.broadcast %68 : vector<8x1xf32> to vector<8x32xf32>
      %77 = arith.subf %62, %76 : vector<8x32xf32>
      %cst_50 = arith.constant 9.99999974E-6 : f32
      %78 = vector.broadcast %cst_50 : f32 to vector<8x1xf32>
      %79 = arith.addf %75, %78 : vector<8x1xf32>
      %80 = math.rsqrt %79 : vector<8x1xf32>
      %81 = vector.broadcast %80 : vector<8x1xf32> to vector<8x32xf32>
      %82 = arith.mulf %77, %81 : vector<8x32xf32>
      %83 = vector.broadcast %63 : vector<1x32xf32> to vector<8x32xf32>
      %84 = arith.mulf %82, %83 : vector<8x32xf32>
      %85 = vector.broadcast %64 : vector<1x32xf32> to vector<8x32xf32>
      %86 = arith.addf %84, %85 : vector<8x32xf32>
      %87 = arith.truncf %86 : vector<8x32xf32> to vector<8x32xbf16>
      %c0_51 = arith.constant 0 : index
      %c0_52 = arith.constant 0 : index
      %88 = vector.load %arg16[%c0_51, %c0_52] : memref<32x64xbf16, #tpu.memory_space<vmem>>, vector<32x64xbf16>
      %cst_53 = arith.constant dense<0.000000e+00> : vector<8x64xf32>
      %89 = tpu.matmul %87, %88, %cst_53 {dimension_numbers = #tpu.dot_dimension_numbers<[1], [0], [0], [1], [0, 0, 1, 1], [], []>} : vector<8x32xbf16>, vector<32x64xbf16>, vector<8x64xf32> -> vector<8x64xf32>
      %c0_54 = arith.constant 0 : index
      %c0_55 = arith.constant 0 : index
      %90 = vector.load %arg17[%c0_54, %c0_55] : memref<1x64xf32, #tpu.memory_space<vmem>>, vector<1x64xf32>
      %91 = vector.broadcast %90 : vector<1x64xf32> to vector<8x64xf32>
      %92 = arith.addf %89, %91 : vector<8x64xf32>
      %cst_56 = arith.constant 5.000000e-01 : f32
      %93 = vector.broadcast %cst_56 : f32 to vector<8x64xf32>
      %94 = arith.mulf %93, %92 : vector<8x64xf32>
      %cst_57 = arith.constant 0.707106769 : f32
      %95 = vector.broadcast %cst_57 : f32 to vector<8x64xf32>
      %96 = arith.mulf %92, %95 : vector<8x64xf32>
      %97 = math.erf %96 : vector<8x64xf32>
      %cst_58 = arith.constant 1.000000e+00 : f32
      %98 = vector.broadcast %cst_58 : f32 to vector<8x64xf32>
      %99 = arith.addf %98, %97 : vector<8x64xf32>
      %100 = arith.mulf %94, %99 : vector<8x64xf32>
      %101 = arith.truncf %100 : vector<8x64xf32> to vector<8x64xbf16>
      %c0_59 = arith.constant 0 : index
      %c0_60 = arith.constant 0 : index
      %102 = vector.load %arg18[%c0_59, %c0_60] : memref<64x32xbf16, #tpu.memory_space<vmem>>, vector<64x32xbf16>
      %cst_61 = arith.constant dense<0.000000e+00> : vector<8x32xf32>
      %103 = tpu.matmul %101, %102, %cst_61 {dimension_numbers = #tpu.dot_dimension_numbers<[1], [0], [0], [1], [0, 0, 1, 1], [], []>} : vector<8x64xbf16>, vector<64x32xbf16>, vector<8x32xf32> -> vector<8x32xf32>
      %c0_62 = arith.constant 0 : index
      %c0_63 = arith.constant 0 : index
      %104 = vector.load %arg19[%c0_62, %c0_63] : memref<1x32xf32, #tpu.memory_space<vmem>>, vector<1x32xf32>
      %105 = vector.broadcast %104 : vector<1x32xf32> to vector<8x32xf32>
      %106 = arith.addf %103, %105 : vector<8x32xf32>
      %107 = arith.addf %62, %106 : vector<8x32xf32>
      %c0_64 = arith.constant 0 : index
      %c0_65 = arith.constant 0 : index
      %c0_66 = arith.constant 0 : index
      %108 = vector.load %arg20[%c0_64, %c0_65, %c0_66] : memref<1x8x32xf32, #tpu.memory_space<vmem>>, vector<1x8x32xf32>
      %109 = vector.shape_cast %108 : vector<1x8x32xf32> to vector<8x32xf32>
      %110 = vector.shape_cast %107 : vector<8x32xf32> to vector<1x8x32xf32>
      tpu.vector_store %arg20[%c0_64, %c0_65, %c0_66], %110 {strides = array<i32>} : memref<1x8x32xf32, #tpu.memory_space<vmem>>, vector<1x8x32xf32>,
    } else {
    }
    return
  }
  func.func @transform_0(%arg0: i32, %arg1: i32, %arg2: i32) -> (i32, i32, i32) {
    %c0_i32 = arith.constant 0 : i32
    %c0_i32_0 = arith.constant 0 : i32
    %c0_i32_1 = arith.constant 0 : i32
    return %arg0, %c0_i32, %c0_i32_0 : i32, i32, i32
  }
  func.func @transform_1(%arg0: i32, %arg1: i32, %arg2: i32) -> (i32, i32, i32) {
    %c0_i32 = arith.constant 0 : i32
    %c0_i32_0 = arith.constant 0 : i32
    %c0_i32_1 = arith.constant 0 : i32
    return %arg2, %c0_i32, %c0_i32_0 : i32, i32, i32
  }
  func.func @transform_2(%arg0: i32, %arg1: i32, %arg2: i32) -> (i32, i32, i32) {
    %c0_i32 = arith.constant 0 : i32
    %c0_i32_0 = arith.constant 0 : i32
    %c0_i32_1 = arith.constant 0 : i32
    return %arg2, %c0_i32, %c0_i32_0 : i32, i32, i32
  }
  func.func @transform_3(%arg0: i32, %arg1: i32, %arg2: i32) -> (i32, i32, i32) {
    %c0_i32 = arith.constant 0 : i32
    %c0_i32_0 = arith.constant 0 : i32
    %c0_i32_1 = arith.constant 0 : i32
    return %arg2, %c0_i32, %c0_i32_0 : i32, i32, i32
  }
  func.func @transform_4(%arg0: i32, %arg1: i32, %arg2: i32) -> (i32, i32, i32) {
    %c0_i32 = arith.constant 0 : i32
    %c0_i32_0 = arith.constant 0 : i32
    %c0_i32_1 = arith.constant 0 : i32
    return %arg2, %c0_i32, %c0_i32_0 : i32, i32, i32
  }
  func.func @transform_5(%arg0: i32, %arg1: i32, %arg2: i32) -> (i32, i32, i32) {
    %c0_i32 = arith.constant 0 : i32
    %c0_i32_0 = arith.constant 0 : i32
    %c0_i32_1 = arith.constant 0 : i32
    return %arg2, %c0_i32, %c0_i32_0 : i32, i32, i32
  }
  func.func @transform_6(%arg0: i32, %arg1: i32, %arg2: i32) -> (i32, i32, i32) {
    %c0_i32 = arith.constant 0 : i32
    %c0_i32_0 = arith.constant 0 : i32
    %c0_i32_1 = arith.constant 0 : i32
    return %arg2, %c0_i32, %c0_i32_0 : i32, i32, i32
  }
  func.func @transform_7(%arg0: i32, %arg1: i32, %arg2: i32) -> (i32, i32, i32) {
    %c0_i32 = arith.constant 0 : i32
    %c0_i32_0 = arith.constant 0 : i32
    %c0_i32_1 = arith.constant 0 : i32
    return %arg2, %c0_i32, %c0_i32_0 : i32, i32, i32
  }
  func.func @transform_8(%arg0: i32, %arg1: i32, %arg2: i32) -> (i32, i32) {
    %c0_i32 = arith.constant 0 : i32
    %c0_i32_0 = arith.constant 0 : i32
    %c0_i32_1 = arith.constant 0 : i32
    return %c0_i32, %c0_i32_0 : i32, i32
  }
  func.func @transform_9(%arg0: i32, %arg1: i32, %arg2: i32) -> (i32, i32) {
    %c0_i32 = arith.constant 0 : i32
    %c0_i32_0 = arith.constant 0 : i32
    %c0_i32_1 = arith.constant 0 : i32
    return %c0_i32, %c0_i32_0 : i32, i32
  }
  func.func @transform_10(%arg0: i32, %arg1: i32, %arg2: i32) -> (i32, i32) {
    %c0_i32 = arith.constant 0 : i32
    %c0_i32_0 = arith.constant 0 : i32
    %c0_i32_1 = arith.constant 0 : i32
    return %c0_i32, %c0_i32_0 : i32, i32
  }
  func.func @transform_11(%arg0: i32, %arg1: i32, %arg2: i32) -> (i32, i32) {
    %c0_i32 = arith.constant 0 : i32
    %c0_i32_0 = arith.constant 0 : i32
    %c0_i32_1 = arith.constant 0 : i32
    return %c0_i32, %c0_i32_0 : i32, i32
  }
  func.func @transform_12(%arg0: i32, %arg1: i32, %arg2: i32) -> (i32, i32) {
    %c0_i32 = arith.constant 0 : i32
    %c0_i32_0 = arith.constant 0 : i32
    %c0_i32_1 = arith.constant 0 : i32
    return %c0_i32, %c0_i32_0 : i32, i32
  }
  func.func @transform_13(%arg0: i32, %arg1: i32, %arg2: i32) -> (i32, i32) {
    %c0_i32 = arith.constant 0 : i32
    %c0_i32_0 = arith.constant 0 : i32
    %c0_i32_1 = arith.constant 0 : i32
    return %c0_i32, %c0_i32_0 : i32, i32
  }
  func.func @transform_14(%arg0: i32, %arg1: i32, %arg2: i32) -> (i32, i32) {
    %c0_i32 = arith.constant 0 : i32
    %c0_i32_0 = arith.constant 0 : i32
    %c0_i32_1 = arith.constant 0 : i32
    return %c0_i32, %c0_i32_0 : i32, i32
  }
  func.func @transform_15(%arg0: i32, %arg1: i32, %arg2: i32) -> (i32, i32) {
    %c0_i32 = arith.constant 0 : i32
    %c0_i32_0 = arith.constant 0 : i32
    %c0_i32_1 = arith.constant 0 : i32
    return %c0_i32, %c0_i32_0 : i32, i32
  }
  func.func @transform_16(%arg0: i32, %arg1: i32, %arg2: i32) -> (i32, i32) {
    %c0_i32 = arith.constant 0 : i32
    %c0_i32_0 = arith.constant 0 : i32
    %c0_i32_1 = arith.constant 0 : i32
    return %c0_i32, %c0_i32_0 : i32, i32
  }
  func.func @transform_17(%arg0: i32, %arg1: i32, %arg2: i32) -> (i32, i32, i32) {
    %c0_i32 = arith.constant 0 : i32
    %c0_i32_0 = arith.constant 0 : i32
    return %arg0, %arg1, %c0_i32 : i32, i32, i32
  }
}

</mosaic_0001>

<bundles_post_ra>
// kernel: tpu_custom_call.1
= control target key start
LH: loop header
LB: loop body
LE: loop exit
PB: predicated region body
PF: predicated region fallthrough
CT: control target
= control target key end

     0   :  { %s2155_s0 = inlined_call_operand.vmem [shape: f32[2,8,32], index: 0, kind: input, shape index: {}]   ;;  %s2156_s1 = inlined_call_operand.vmem [shape: bf16[4,32,8], index: 1, kind: input, shape index: {}]   ;;  %s2157_s2 = inlined_call_operand.vmem [shape: f32[4,1,8], index: 2, kind: input, shape index: {}]   ;;  %s2158_s3 = inlined_call_operand.vmem [shape: bf16[4,32,8], index: 3, kind: input, shape index: {}]   ;;  %s2159_s4 = inlined_call_operand.vmem [shape: f32[4,1,8], index: 4, kind: input, shape index: {}]   ;;  %s2160_s5 = inlined_call_operand.vmem [shape: bf16[4,32,8], index: 5, kind: input, shape index: {}]   ;;  %s2161_s6 = inlined_call_operand.vmem [shape: f32[4,1,8], index: 6, kind: input, shape index: {}]   ;;  %s2162_s7 = inlined_call_operand.vmem [shape: bf16[4,8,32], index: 7, kind: input, shape index: {}]   ;;  %s2163_s8 = inlined_call_operand.vmem [shape: f32[1,32], index: 8, kind: input, shape index: {}]   ;;  %s2164_s9 = inlined_call_operand.vmem [shape: f32[1,32], index: 9, kind: input, shape index: {}]   ;;  %s2165_s10 = inlined_call_operand.vmem [shape: f32[1,32], index: 10, kind: input, shape index: {}]   ;;  %s2166_s11 = inlined_call_operand.vmem [shape: f32[1,32], index: 11, kind: input, shape index: {}]   ;;  %s2167_s12 = inlined_call_operand.vmem [shape: f32[1,32], index: 12, kind: input, shape index: {}]   ;;  %s2168_s13 = inlined_call_operand.vmem [shape: bf16[32,64], index: 13, kind: input, shape index: {}]   ;;  %s2169_s14 = inlined_call_operand.vmem [shape: f32[1,64], index: 14, kind: input, shape index: {}]   ;;  %s2170_s15 = inlined_call_operand.vmem [shape: bf16[64,32], index: 15, kind: input, shape index: {}]   ;;  %s2171_s16 = inlined_call_operand.vmem [shape: f32[1,32], index: 16, kind: input, shape index: {}]   ;;  %s2172_s17 = inlined_call_operand.hbm [shape: f32[2,8,32], index: 17, kind: output, shape index: {}]  }
   0x1   :  { %2188 = sst [smem:[#allocation19_spill]] %s2155_s0 }
   0x2   :  { %2189 = sst [smem:[#allocation20_spill]] %s2156_s1 }
   0x3   :  { %2190 = sst [smem:[#allocation21_spill]] %s2166_s11 }
   0x4   :  { %2191 = sst [smem:[#allocation22_spill]] %s2167_s12 }
   0x5   :  { %2192 = sst [smem:[#allocation23_spill]] %s2169_s14 }
   0x6   :  { %2193 = sst [smem:[#allocation24_spill]] %s2170_s15 }
   0x7   :  { %2194 = sst [smem:[#allocation25_spill]] %s2171_s16 }
   0x8   :  { %2195 = sst [smem:[#allocation26_spill]] %s2172_s17 }
   0x9   :  { %22 = vsyncpa [#allocation5], 0 }
   0xa   :  { %24 = vsyncpa [#allocation5 + $0x1], 0  ;;  %s1888_s24 = smov 0   ;;  %s1890_s25 = smov 0  }
   0xb   :  { %s1892_s26 = smov 0   ;;  %s1894_s27 = smov 0  }
   0xc   :  { %s1896_s28 = smov 0   ;;  %s1898_s29 = smov 0  }
   0xd   :  { %s1900_s0 = smov 0   ;;  %s1902_s30 = smov 0  }
   0xe LB: > { %2196 = sst [smem:[#allocation7_spill]] %s1762_s24  ;;  %s1460_s18 = sadd.s32 4294967295, %s1790_s30   ;;  %s1790_s30 = sphi %s1902_s30, %s30_s30   ;;  %s1786_s0 = sphi %s1900_s0, %s2232_s0   ;;  %s1782_s29 = sphi %s1898_s29, %s2231_s29   ;;  %s1778_s28 = sphi %s1896_s28, %s2230_s28   ;;  %s1774_s27 = sphi %s1894_s27, %s2229_s27   ;;  %s1770_s26 = sphi %s1892_s26, %s2228_s26   ;;  %s1766_s25 = sphi %s1890_s25, %s2227_s25   ;;  %s1762_s24 = sphi %s1888_s24, %s2226_s24  }
   0xf   : > { %2197 = sst [smem:[#allocation8_spill]] %s1766_s25  ;;  %s1461_s19 = sadd.s32 4294967294, %s1790_s30  }
  0x10   : > { %2198 = sst [smem:[#allocation9_spill]] %s1770_s26  ;;  %s42_s1 = sadd.s32 1, %s1782_s29 }
  0x11   : > { %2199 = sst [smem:[#allocation10_spill]] %s1778_s28  ;;  %p43_p0 = scmp.ge.s32.totalorder %s42_s1, 4 }
  0x12   : > { %2200 = sst [smem:[#allocation11_spill]] %s1782_s29  ;;  %s49_s20 = sadd.s32 1, %s1786_s0 }
  0x13   : > { %2201 = sst [smem:[#allocation12_spill]] %s1786_s0  ;;  %p465_p1 = scmp.ne.s32.totalorder %s1770_s26, %s1766_s25 }
  0x14   : > { %2202 = sst [smem:[#allocation13_spill]] %s1790_s30  ;;  %p466_p2 = scmp.eq.s32.totalorder %s1460_s18, 7 }
  0x15   : > { %s2234_s1 = smov (%p43_p0, %s42_s1), 0  ;;  %s2236_s20 = smov (!%p43_p0, %s49_s20), %s1786_s0 }
  0x16   : > { %2203 = sst [smem:[#allocation14_spill]] %s2234_s1  ;;  %p1937_p3 = por %p466_p2, %p465_p1 }
  0x17   : > { %p471_p4 = scmp.ne.s32.totalorder %s1766_s25, %s1762_s24  ;;  %p51_p5 = scmp.ge.s32.totalorder %s2236_s20, 2 }
  0x18   : > { %s2204_s21 = scalar_select %p1937_p3, 1, 0 }
  0x19   : > { %p472_p6 = scmp.eq.s32.totalorder %s1461_s19, 7  ;;  %p1464_p7 = scmp.ge.s32.totalorder %s1790_s30, 1 }
  0x1a   : > { %2205 = sst [smem:[#allocation15_spill]] %s2204_s21  ;;  %p573_p8 = scmp.lt.s32.totalorder %s1790_s30, 9 }
  0x1b   : > { %s2238_s20 = smov (%p51_p5, %s2236_s20), 0  ;;  %p1947_p9 = por %p472_p6, %p471_p4 }
  0x1c   : > { %2206 = sst [smem:[#allocation16_spill]] %s2238_s20  ;;  %p574_p10 = pnand %p1464_p7, %p573_p8 }
  0x1d   : > { %s2207_s22 = scalar_select %p1947_p9, 1, 0 }
  0x1e   : > { %s450_s23 = ssub.s32 %s1786_s0, %s2238_s20  ;;  %s455_s18 = sadd.s32 1, %s1770_s26 }
  0x1f   : > { %2208 = sst [smem:[#allocation17_spill]] %s2207_s22  ;;  %p453_p11 = scmp.eq.s32.totalorder %s450_s23, 0 }
  0x20   : > { %577 = sbr.rel (%p574_p10) target bundleno = 2352 (0x930), region = 88  ;;  %s2181_s19 = sand.u32 (!%p574_p10), 1, %s1766_s25  }
  0x21   : > { %s1955_s1 = scalar_select %p453_p11, %s1770_s26, %s455_s18  }
  0x22   : > { %p652_p12 = scmp.lt.s32.totalorder (!%p574_p10), %s1778_s28, 1  ;;  %s1961_s29 = sshll.u32 (!%p574_p10), %s2181_s19, 3 }
  0x23   : > { %2209 = sst [smem:[#allocation18_spill]] %s1955_s1  ;;  %p656_p13 = scmp.lt.s32.totalorder (!%p574_p10), %s1774_s27, 3 }
  0x24   : > { %s2210_s1 = sld [smem:[#allocation19_spill]] (!%p574_p10)  ;;  %s2211_s17 = sld [smem:[#allocation20_spill]] (!%p574_p10) }
  0x25   : > { %s651_s15 = scalar_lea.vmem (!%p574_p10), [#allocation4], %s1961_s29  ;;  %p1474_p0 = scmp.ne.s32.totalorder (!%p574_p10), %s1774_s27, 0 }
  0x27   : > { %s653_s22 = scalar_select %p652_p12, %s1778_s28, 1 }
  0x28   : > { %s1966_s20 = scalar_select %p656_p13, %s1774_s27, 3 }
  0x29   : > { %s1466_s23 = sshll.u32 %s653_s22, 3  ;;  %689 = sbr.rel (%p1474_p0) target bundleno = 360 (0x168), region = 92  ;;  %vm693_vm0 = vcmask (!%p1474_p0), 261120   ;;  %v1792_v2 = vmov (!%p1474_p0), 0.0   ;;  %v1475_v12 = vld [vmem:[%s2164_s9] ss:$0 sm:$0xff] (!%p1474_p0) }
  0x2a   : > { %s1971_s26 = scalar_lea.vmem %s2210_s1, %s1466_s23  ;;  %s1510_s24 = sshll.u32 %s1966_s20, 4  ;;  %725 = vst.msk [vmem:[#allocation3] sm:$0xff] (!%p1474_p0), %vm693_vm0, %v1792_v2  ;;  %v1476_v14 = vld [vmem:[%s2165_s10] ss:$0 sm:$0xff] (!%p1474_p0)  ;;  %vm723_vm1 = vcmask (!%p1474_p0), 257024  }
  0x2b   : > { %s1977_s21 = scalar_lea.vmem %s2211_s17, %s1510_s24  ;;  %s1986_s12 = scalar_lea.vmem %s2158_s3, %s1510_s24  ;;  %v690_v0 = vld [vmem:[%s1971_s26] sm:$0xff] (!%p1474_p0) }
  0x2c   : > { %s671_s0 = scalar_lea.vmem %s2159_s4, %s1966_s20  ;;  %s1995_s18 = scalar_lea.vmem %s2160_s5, %s1510_s24  ;;  %v694_v1 = vsel (!%p1474_p0), %vm693_vm0, %v690_v0, 0.0 }
  0x2d   : > { %s679_s19 = scalar_lea.vmem %s2161_s6, %s1966_s20  ;;  %s1473_s25 = sshll.u32 %s1966_s20, 2  ;;  %695 = vadd.xlane.f32.xlu0 (!%p1474_p0), %v694_v1 }
  0x2e   : > { %s2005_s14 = scalar_lea.vmem %s2162_s7, %s1473_s25 }
  0xba   : > { %v696_v3 = vpop.xlane.xlu0 %695 }
  0xbb   : > { %v698_v4 = vmul.f32 0.03125, %v696_v3 }
  0xbd   : > { %v699_v5 = vsub.f32 %v690_v0, %v698_v4 }
  0xbf   : > { %v700_v6 = vmul.f32 %v699_v5, %v699_v5 }
  0xc1   : > { %v701_v7 = vsel %vm693_vm0, %v700_v6, 0.0 }
  0xc2   : > { %702 = vadd.xlane.f32.xlu0 %v701_v7 }
 0x14f   : > { %v703_v8 = vpop.xlane.xlu0 %702 }
 0x150   : > { %v704_v9 = vmul.f32 0.03125, %v703_v8 }
 0x152   : > { %v705_v10 = vadd.f32 1e-05, %v704_v9 }
 0x154   : > { %1674 = vrsqrt.f32 %v705_v10 }
 0x15e   : > { %v1675_v11 = vpop.eup %1674 }
 0x15f   : > { %v707_v13 = vmul.f32 %v1675_v11, %v699_v5 }
 0x161   : > { %v714_v15 = vmul.f32 %v1475_v12, %v707_v13 }
 0x163   : > { %v721_v16 = vadd.f32 %v1476_v14, %v714_v15 }
 0x165   : > { %v722_v17 = vpack.c.bf16 %v721_v16, %v721_v16 }
 0x167   : > { %724 = vst.msk [vmem:[#allocation2] sm:$0xf] %vm723_vm1, %v722_v17 }
 0x168 PF: > { %v1676_v18 = vld [vmem:[%s1986_s12] sm:$0xff]   ;;  %v1793_v19 = vmov 0.0   ;;  %v1677_v20 = vld [vmem:[%s1986_s12 + $0x8] sm:$0xff]   ;;  %vm1794_vm2 = vmmov 0   ;;  %vm755_vm3 = vcmask 261120   ;;  %vm930_vm4 = vcmask 64512   ;;  %s2212_s17 = scalar_lea.vmem %s2157_s2, %s1966_s20 }
 0x169   : > { %1544 = vmatprep.subr.bf16.mxu1 %v1793_v19  ;;  %1536 = vmatprep.subr.bf16.mxu0 %v1793_v19  ;;  %v1678_v21 = vld [vmem:[%s1977_s21] sm:$0xff]   ;;  %v1679_v22 = vld [vmem:[%s1977_s21 + $0x8] sm:$0xff]   ;;  %vm993_vm5 = vcmask 1043456   ;;  %p1492_p1 = scmp.ne.s32.totalorder %s1774_s27, 3 }
 0x16a   : > { %1545 = vmatpush3.bf16.msra.mxu1 %v1676_v18  ;;  %1548 = vmatprep.mubr.msk.bf16.mxu1 %vm1794_vm2, %v1793_v19  ;;  %v1481_v25 = vld [vmem:[%s671_s0] ss:$0 sm:$0xff]  ;;  %v1681_v41 = vld [vmem:[%s1995_s18 + $0x8] sm:$0xff]   ;;  %vm1796_vm6 = vmmov (!%p1492_p1), 0   ;;  %s2213_s11 = sld [smem:[#allocation21_spill]] (!%p1492_p1)  ;;  %s2214_s22 = sld [smem:[#allocation22_spill]] (!%p1492_p1) }
 0x16b   : > { %1546 = vmatprep.subr.bf16.mxu1 %v1793_v19  ;;  %1540 = vmatprep.mubr.msk.bf16.mxu0 %vm1794_vm2, %v1793_v19  ;;  %v1477_v30 = vld [vmem:[%s2212_s17] ss:$0 sm:$0xff]  ;;  %v1037_v7 = vld [vmem:[#allocation3] sm:$0xff]  ;;  %s2215_s21 = sld [smem:[#allocation24_spill]] (!%p1492_p1)  ;;  %vm1246_vm7 = vcmask (!%p1492_p1), 523264  }
 0x16c   : > { %1537 = vmatpush3.bf16.msra.mxu0 %v1678_v21  ;;  %v1680_v40 = vld [vmem:[%s1995_s18] sm:$0xff]  }
 0x16d   : > { %1538 = vmatprep.subr.bf16.mxu0 %v1793_v19  ;;  %v1485_v47 = vld [vmem:[%s679_s19] ss:$0 sm:$0xff]  ;;  %s2216_s19 = sld [smem:[#allocation23_spill]] (!%p1492_p1) }
 0x16e   : > { %1547 = vmatpush3.bf16.msra.mxu1 %v1677_v20  ;;  %v726_v23 = vld [vmem:[#allocation2] sm:$0xf] }
 0x16f   : > { %1560 = vmatprep.subr.bf16.mxu1 %v1793_v19  ;;  %v731_v24 = vld [vmem:[#allocation2] sm:$0xf] }
 0x170   : > { %1539 = vmatpush3.bf16.msra.mxu0 %v1679_v22  ;;  %v1039_v60 = vld [vmem:[%s2005_s14] sm:$0xf]  ;;  %s2217_s14 = sld [smem:[#allocation25_spill]] (!%p1492_p1) }
 0x171   : > { %1549 = vmatmul.mubr.msk.bf16.vlgmr.msra.gmra.mrb[0].mxu1 %vm755_vm3, %v726_v23  ;;  %1552 = vmatprep.subr.bf16.mxu0 %v1793_v19  ;;  %v1044_v61 = vsel %vm993_vm5, %v1039_v60, 0  ;;  %v1093_v13 = vld [vmem:[%s1971_s26] sm:$0xff] (!%p1492_p1) }
 0x172   : > { %1562 = vmatprep.mubr.msk.bf16.mxu1 %vm1794_vm2, %v1793_v19  ;;  %v1493_v15 = vld [vmem:[%s2163_s8] ss:$0 sm:$0xff] (!%p1492_p1) }
 0x173   : > { %1541 = vmatmul.mubr.msk.bf16.vlgmr.msra.gmra.mrb[0].mxu0 %vm755_vm3, %v731_v24  ;;  %v1686_v24 = vld [vmem:[%s2168_s13] sm:$0xff] (!%p1492_p1)  }
 0x174   : > { %1556 = vmatprep.mubr.msk.bf16.mxu0 %vm1794_vm2, %v1793_v19  ;;  %1553 = vmatpush3.bf16.msra.mxu0 %v1680_v40  ;;  %v1691_v40 = vld [vmem:[%s2215_s21 + $0x18] sm:$0xff] (!%p1492_p1)  }
 0x175   : > { %1554 = vmatprep.subr.bf16.mxu0 %v1793_v19 }
 0x178   : > { %1555 = vmatpush3.bf16.msra.mxu0 %v1681_v41  ;;  %v1496_v41 = vld [vmem:[%s2216_s19] ss:$0 sm:$0xff] (!%p1492_p1) }
 0x179   : > { %1566 = vmatprep.subr.bf16.mxu0 %v1793_v19 }
 0x17b   : > { %1557 = vmatmul.mubr.msk.bf16.vlgmr.msra.gmra.mrb[4].mxu0 %vm755_vm3, %v726_v23 }
 0x17c   : > { %1568 = vmatprep.mubr.msk.bf16.mxu0 %vm1794_vm2, %v1793_v19 }
 0x244   : > { %v859_v26 = vpop.f32.mrb[0].mxu1 }
 0x245   : > { %v860_v27 = vadd.f32 %v1481_v25, %v859_v26  ;;  %v1550_v28 = vpop.f32.mrb[1].mxu1  ;;  %v1795_v25 = vmov (!%p1492_p1), 0.0   ;;  %v1687_v26 = vld [vmem:[%s2168_s13 + $0x8] sm:$0xff] (!%p1492_p1)  }
 0x246   : > { %v862_v29 = vpop.f32.mrb[2].mxu1  ;;  %v793_v31 = vpop.f32.mrb[0].mxu0 }
 0x247   : > { %v929_v32 = vpack.c.bf16 %v860_v27, %v860_v27  ;;  %v1551_v33 = vpop.f32.mrb[3].mxu1  ;;  %v1542_v34 = vpop.f32.mrb[1].mxu0  ;;  %v794_v37 = vadd.f32 %v1477_v30, %v793_v31  ;;  %v1494_v31 = vld [vmem:[%s2213_s11] ss:$0 sm:$0xff] (!%p1492_p1) }
 0x248   : > { %v796_v35 = vpop.f32.mrb[2].mxu0  ;;  %v1495_v33 = vld [vmem:[%s2214_s22] ss:$0 sm:$0xff] (!%p1492_p1) }
 0x249   : > { %v935_v36 = vsel %vm930_vm4, %v929_v32, 0  ;;  %v1543_v38 = vpop.f32.mrb[3].mxu0  ;;  %v928_v39 = vpack.c.bf16 %v794_v37, %v794_v37  ;;  %v1688_v37 = vld [vmem:[%s2215_s21] sm:$0xff] (!%p1492_p1)  }
 0x24a   : > { %1561 = vmatpush3.bf16.xpose.msra.mxu1 %v935_v36  ;;  %v1689_v38 = vld [vmem:[%s2215_s21 + $0x8] sm:$0xff] (!%p1492_p1)  }
 0x24b   : > { %1572 = vmatprep.subr.bf16.mxu1 %v1793_v19 }
 0x24e   : > { %v922_v48 = vpop.f32.mrb[4].mxu0 }
 0x24f   : > { %v923_v49 = vadd.f32 %v1485_v47, %v922_v48  ;;  %v1558_v50 = vpop.f32.mrb[5].mxu0 }
 0x250   : > { %v925_v51 = vpop.f32.mrb[6].mxu0 }
 0x251   : > { %1563 = vmatmul.mubr.msk.bf16.vlgmr.msra.gmra.mrb[4].mxu1 %vm930_vm4, %v928_v39  ;;  %v989_v52 = vpack.c.bf16 %v923_v49, %v923_v49  ;;  %v1559_v53 = vpop.f32.mrb[7].mxu0  ;;  %v1690_v39 = vld [vmem:[%s2215_s21 + $0x10] sm:$0xff] (!%p1492_p1)  }
 0x252   : > { %1574 = vmatprep.mubr.msk.bf16.mxu1 %vm1794_vm2, %v1793_v19  ;;  %1573 = vmatpush3.bf16.msra.mxu1 %v1044_v61  ;;  %v1500_v53 = vld [vmem:[%s2217_s14] ss:$0 sm:$0xff] (!%p1492_p1) }
 0x253   : > { %v995_v54 = vsel %vm993_vm5, %v989_v52, 0  ;;  %1586 = vmatprep.subr.bf16.mxu1 (!%p1492_p1), %v1795_v25 }
 0x254   : > { %1567 = vmatpush3.bf16.msra.mxu0 %v995_v54 }
 0x255   : > { %1578 = vmatprep.subr.bf16.mxu0 (!%p1492_p1), %v1795_v25 }
 0x324   : > { %v971_v42 = vpop.f32.mrb[4].mxu1 }
 0x325   : > { %v1564_v43 = vpop.f32.mrb[5].mxu1  ;;  %v977_v44 = vsel %vm930_vm4, %v971_v42, -inf }
 0x326   : > { %978 = vmax.xlane.f32.xlu0 %v977_v44  ;;  %v974_v45 = vpop.f32.mrb[6].mxu1 }
 0x327   : > { %v1565_v46 = vpop.f32.mrb[7].mxu1 }
 0x3b3   : > { %v979_v55 = vpop.xlane.xlu0 %978 }
 0x3b4   : > { %v980_v56 = vsub.f32 %v971_v42, %v979_v55 }
 0x3b6   : > { %v981_v57 = vmul.f32 1.442695, %v980_v56 }
 0x3b8   : > { %1682 = vpow2.f32 %v981_v57 }
 0x3c2   : > { %v1683_v58 = vpop.eup %1682 }
 0x3c3   : > { %v983_v59 = vsel %vm930_vm4, %v1683_v58, 0.0 }
 0x3c4   : > { %984 = vadd.xlane.f32.xlu0 %v983_v59 }
 0x451   : > { %v985_v62 = vpop.xlane.xlu0 %984 }
 0x452   : > { %1684 = vrcp.f32 %v985_v62 }
 0x45c   : > { %v1685_v63 = vpop.eup %1684 }
 0x45d   : > { %v987_v0 = vmul.f32 %v1685_v63, %v1683_v58 }
 0x45f   : > { %v988_v1 = vpack.c.bf16 %v987_v0, %v987_v0 }
 0x461   : > { %1569 = vmatmul.mubr.msk.bf16.vlgmr.msra.gmra.mrb[8].mxu0 %vm930_vm4, %v988_v1 }
 0x462   : > { %1582 = vmatprep.mubr.msk.bf16.mxu0 (!%p1492_p1), %vm1796_vm6, %v1795_v25  ;;  %1579 = vmatpush3.bf16.msra.mxu0 (!%p1492_p1), %v1686_v24 }
 0x463   : > { %1580 = vmatprep.subr.bf16.mxu0 (!%p1492_p1), %v1795_v25 }
 0x466   : > { %1581 = vmatpush3.bf16.msra.mxu0 (!%p1492_p1), %v1687_v26 }
 0x534   : > { %v1031_v2 = vpop.f32.mrb[8].mxu0 }
 0x535   : > { %v1038_v3 = vpack.c.bf16 %v1031_v2, %v1031_v2  ;;  %v1570_v4 = vpop.f32.mrb[9].mxu0 }
 0x536   : > { %v1034_v5 = vpop.f32.mrb[10].mxu0 }
 0x537   : > { %v1571_v6 = vpop.f32.mrb[11].mxu0  ;;  %1575 = vmatmul.mubr.msk.bf16.vlgmr.msra.gmra.mrb[8].mxu1 %vm930_vm4, %v1038_v3 }
 0x538   : > { %1594 = vmatprep.mubr.msk.bf16.mxu1 (!%p1492_p1), %vm1796_vm6, %v1795_v25  ;;  %1587 = vmatpush3.bf16.msra.mxu1 (!%p1492_p1), %v1688_v37 }
 0x539   : > { %1588 = vmatprep.subr.bf16.mxu1 (!%p1492_p1), %v1795_v25 }
 0x53c   : > { %1589 = vmatpush3.bf16.msra.mxu1 (!%p1492_p1), %v1689_v38 }
 0x53d   : > { %1590 = vmatprep.subr.bf16.mxu1 (!%p1492_p1), %v1795_v25 }
 0x540   : > { %1591 = vmatpush3.bf16.msra.mxu1 (!%p1492_p1), %v1690_v39 }
 0x541   : > { %1592 = vmatprep.subr.bf16.mxu1 (!%p1492_p1), %v1795_v25 }
 0x544   : > { %1593 = vmatpush3.bf16.msra.mxu1 (!%p1492_p1), %v1691_v40 }
 0x607   : > { %1091 = sbr.rel (%p1492_p1) target bundleno = 2326 (0x916), region = 96 }
 0x60a   : > { %v1080_v8 = vpop.f32.mrb[8].mxu1 }
 0x60b   : > { %v1086_v9 = vadd.f32 %v1080_v8, %v1037_v7  ;;  %v1576_v10 = vpop.f32.mrb[9].mxu1 }
 0x60c   : > { %v1083_v11 = vpop.f32.mrb[10].mxu1 }
 0x60d   : > { %1087 = vst.msk [vmem:[#allocation3] sm:$0xff] %vm755_vm3, %v1086_v9  ;;  %v1577_v12 = vpop.f32.mrb[11].mxu1 }
 0x614   : > { %v1094_v14 = vld [vmem:[#allocation3] sm:$0xff] }
 0x615   : > { %v1095_v16 = vadd.f32 %v1094_v14, %v1093_v13 }
 0x617   : > { %v2059_v17 = vadd.f32 %v1493_v15, %v1095_v16 }
 0x619   : > { %v1106_v18 = vsel %vm755_vm3, %v2059_v17, 0.0 }
 0x61a   : > { %1107 = vadd.xlane.f32.xlu0 %v1106_v18 }
 0x6a7   : > { %v1108_v19 = vpop.xlane.xlu0 %1107 }
 0x6a8   : > { %v1110_v20 = vmul.f32 0.03125, %v1108_v19 }
 0x6aa   : > { %v1111_v21 = vsub.f32 %v2059_v17, %v1110_v20 }
 0x6ac   : > { %v1112_v22 = vmul.f32 %v1111_v21, %v1111_v21 }
 0x6ae   : > { %v1113_v23 = vsel %vm755_vm3, %v1112_v22, 0.0 }
 0x6af   : > { %1114 = vadd.xlane.f32.xlu0 %v1113_v23 }
 0x73c   : > { %v1115_v27 = vpop.xlane.xlu0 %1114 }
 0x73d   : > { %v1116_v28 = vmul.f32 0.03125, %v1115_v27 }
 0x73f   : > { %v1117_v29 = vadd.f32 1e-05, %v1116_v28 }
 0x741   : > { %1692 = vrsqrt.f32 %v1117_v29 }
 0x74b   : > { %v1693_v30 = vpop.eup %1692 }
 0x74c   : > { %v1119_v32 = vmul.f32 %v1693_v30, %v1111_v21 }
 0x74e   : > { %v1126_v34 = vmul.f32 %v1494_v31, %v1119_v32 }
 0x750   : > { %v1133_v35 = vadd.f32 %v1495_v33, %v1126_v34 }
 0x752   : > { %v1134_v36 = vpack.c.bf16 %v1133_v35, %v1133_v35 }
 0x754   : > { %1583 = vmatmul.mubr.msk.bf16.vlgmr.msra.gmra.mrb[0].mxu0 %vm755_vm3, %v1134_v36 }
 0x827   : > { %v1195_v42 = vpop.f32.mrb[0].mxu0 }
 0x828   : > { %v1196_v43 = vadd.f32 %v1496_v41, %v1195_v42  ;;  %v1584_v44 = vpop.f32.mrb[1].mxu0 }
 0x829   : > { %v1198_v45 = vpop.f32.mrb[2].mxu0 }
 0x82a   : > { %v1202_v46 = vmul.f32 0.70710677, %v1196_v43  ;;  %v1585_v47 = vpop.f32.mrb[3].mxu0  ;;  %v1201_v49 = vmul.f32 0.5, %v1196_v43 }
 0x82c   : > { %1694 = verf.f32 %v1202_v46 }
 0x836   : > { %v1695_v48 = vpop.eup %1694 }
 0x837   : > { %v1204_v50 = vadd.f32 1.0, %v1695_v48 }
 0x839   : > { %v1205_v51 = vmul.f32 %v1204_v50, %v1201_v49 }
 0x83b   : > { %v1206_v52 = vpack.c.bf16 %v1205_v51, %v1205_v51 }
 0x83d   : > { %1595 = vmatmul.mubr.msk.bf16.vlgmr.msra.gmra.mrb[0].mxu1 %vm1246_vm7, %v1206_v52 }
 0x910   : > { %v1284_v54 = vpop.f32.mrb[0].mxu1 }
 0x911   : > { %v1285_v55 = vadd.f32 %v1500_v53, %v1284_v54  ;;  %v1596_v56 = vpop.f32.mrb[1].mxu1 }
 0x912   : > { %v1287_v57 = vpop.f32.mrb[2].mxu1 }
 0x913   : > { %v1290_v58 = vadd.f32 %v1285_v55, %v2059_v17  ;;  %v1597_v59 = vpop.f32.mrb[3].mxu1 }
 0x915   : > { %1291 = vst.msk [vmem:[%s651_s15] sm:$0xff] %vm755_vm3, %v1290_v58 }
 0x916 PF: > { %s2218_s11 = sld [smem:[#allocation10_spill]]  ;;  %s2221_s23 = sld [smem:[#allocation26_spill]] }
 0x917   : > { %s2219_s16 = sld [smem:[#allocation8_spill]]  ;;  %s1307_s0 = sshll.u32 %s651_s15, 4  ;;  %s1308_s0 = int_to_ptr.vmem [resolvable:$true] %s1307_s0 }
 0x918   : > { %s1696_s18 = scalar_lea.vmem %s1308_s0, 128  ;;  %s1797_s26 = smov [#allocation4]  }
 0x919   : > { %p1697_p2 = scmp.ne.s32.totalorder %s1308_s0, %s1696_s18  ;;  %s1700_s27 = sshll.u32 %s1797_s26, 4  ;;  %s1701_s27 = int_to_ptr.vmem [resolvable:$false] %s1700_s27 }
 0x91a   : > { %s1702_s19 = scalar_lea.vmem %s1701_s27, 256  ;;  %p1703_p6 = scmp.lt.s32.totalorder %s1308_s0, %s1701_s27 }
 0x91b   : > { %p1698_p4 = pnand %p1697_p2, %p1937_p3  ;;  %p1704_p7 = scmp.lt.s32.totalorder %s1702_s19, %s1696_s18 }
 0x91c   : > { %s1507_s22 = sshll.u32 %s2218_s11, 7 }
 0x91d   : > { %s2104_s17 = scalar_lea.hbm %s2221_s23, %s1507_s22  ;;  %s2222_s30 = sand.u32 1, %s2219_s16  }
 0x91e   : > { %s1293_s20 = scalar_lea.sflag [#allocation5], %s2222_s30  ;;  %p1699_p5 = pneg %p1698_p4 }
 0x91f   : > { %p1705_p8 = por %p1704_p7, %p1703_p6 }
 0x921   : > { %p1706_p10 = pnand %p1705_p8, %p1699_p5 }
 0x923   : > { %1709 = shalt.err (!%p1706_p10)
}
 0x924   : > { %s1710_s29 = scalar_lea.hbm %s2104_s17, 128  ;;  %s1714_s28 = scalar_lea.hbm %s2221_s23, 256 }
 0x925   : > { %p1711_p11 = scmp.ne.s32.totalorder %s2104_s17, %s1710_s29  ;;  %p1715_p0 = scmp.lt.u32.totalorder %s2104_s17, %s2221_s23 }
 0x926   : > { %p1716_p1 = scmp.lt.u32.totalorder %s1714_s28, %s1710_s29  ;;  %p1718_p4 = scmp.lt.u32.totalorder %s1710_s29, %s2104_s17 }
 0x927   : > { %p1712_p12 = pnand %p1711_p11, %p1937_p3 }
 0x928   : > { %p1717_p2 = por %p1716_p1, %p1715_p0 }
 0x929   : > { %p1713_p13 = pneg %p1712_p12 }
 0x92a   : > { %p1719_p5 = por %p1718_p4, %p1717_p2 }
 0x92c   : > { %p1720_p6 = pnand %p1719_p5, %p1713_p13 }
 0x92e   : > { %1723 = shalt.err (!%p1720_p6)
}
 0x92f   : > { %1598 = dma.vmem_to_hbm [thread:$0]  (%p1937_p3), %s1308_s0, 128, %s2104_s17, %s1293_s20  }
 0x930 PF: > { %s2223_s16 = sld [smem:[#allocation13_spill]]  ;;  %s2224_s22 = sld [smem:[#allocation7_spill]] }
 0x936   : > { %p1604_p7 = scmp.ge.s32.totalorder %s2223_s16, 2  ;;  %s1319_s1 = sand.u32 1, %s2224_s22  }
 0x937   : > { %s1320_s30 = scalar_lea.sflag [#allocation5], %s1319_s1 }
 0x938   : > { %p1601_p8 = pnand %p1604_p7, %p1947_p9 }
 0x93a   : > { %1757 = dma.done.wait (!%p1601_p8), %s1320_s30, 128  }
 0x93b   : > { %1759 = vsyncadd (!%p1601_p8), %s1320_s30, 4294967168  ;;  %s30_s30 = sadd.s32 1, %s2223_s16   ;;  %s2226_s24 = sld [smem:[#allocation8_spill]] }
 0x93c   : > { %p27_p10 = scmp.ge.s32.totalorder %s30_s30, 10   ;;  %s2227_s25 = sld [smem:[#allocation9_spill]] }
 0x93d   : > { %s2228_s26 = sld [smem:[#allocation18_spill]]  ;;  %s2229_s27 = sld [smem:[#allocation11_spill]] }
 0x93e   : > { %s2230_s28 = sld [smem:[#allocation12_spill]]  ;;  %s2231_s29 = sld [smem:[#allocation14_spill]] }
 0x93f   : > { %s2232_s0 = sld [smem:[#allocation16_spill]]  ;;  %29 = sbr.rel (!%p27_p10) target bundleno = 14 (0xe), region = 154 }
 0x946   :  { %1325 = vsyncpa [#allocation5], 1 }
 0x947   :  { %1327 = vsyncpa [#allocation5 + $0x1], 1 }

</bundles_post_ra>
